<compile_context>
chip_gen: v6e
topology: v6e:2x2x1
jax: 0.10.0
libtpu: 0.0.40
codegen_flags: <defaults>
</compile_context>

<pallas_src>
import jax
import jax.numpy as jnp
from jax import lax
from jax.experimental import pallas as pl
from jax.experimental.pallas import tpu as pltpu


LANE = 128
SUBLANE = 8


def _round_up(n, m):
    return ((n + m - 1) // m) * m


# ---------------------------------------------------------------------------
# Pallas kernel: per batch-tile contraction  out[b] = sum_l x[b, l] * w[l]
# ---------------------------------------------------------------------------
def _slicer_dot_kernel(x_ref, w_ref, o_ref):
    x = x_ref[...]          # (TB, L) f32 — full lane-dense vregs
    w = w_ref[...]          # (1,  L) f32 — broadcast along sublanes (resident block)
    o_ref[...] = jnp.sum(x * w, axis=-1, keepdims=True).astype(o_ref.dtype)


@jax.jit
def conv_base_slicer_forward(x, w_eff_row):
    """Fused forward: one lane-dense dot per batch element.

    x:         (B, C, H, W)
    w_eff_row: (1, L) composed filter, L = round_up(C*H*W, 128), zero-padded.
    """
    B, C, H, W = x.shape
    L = w_eff_row.shape[1]
    L0 = C * H * W

    # Batch tiling: sublane-aligned tile, padded batch, parallel grid axis.
    TB = min(128, _round_up(B, SUBLANE))
    Bp = _round_up(B, TB)

    # Layout plumbing in the wrapper: lane-dense (B, L) slab for the kernel.
    x_flat = x.reshape(B, L0).astype(jnp.float32)
    x_flat = jnp.pad(x_flat, ((0, Bp - B), (0, L - L0)))

    out = pl.pallas_call(
        _slicer_dot_kernel,
        out_shape=jax.ShapeDtypeStruct((Bp, 1), jnp.float32),
        grid=(Bp // TB,),
        in_specs=[
            pl.BlockSpec((TB, L), lambda i: (i, 0)),   # batch tile of activations
            pl.BlockSpec((1, L), lambda i: (0, 0)),    # composed weight, resident
        ],
        out_specs=pl.BlockSpec((TB, 1), lambda i: (i, 0)),
        compiler_params=pltpu.CompilerParams(
            dimension_semantics=("parallel",)),
    )(x_flat, w_eff_row)

    # Restore the NCHW (B, 1, 1, 1) shape outside the kernel.
    return out[:B].reshape(B, 1, 1, 1).astype(x.dtype)


# ---------------------------------------------------------------------------
# Module-equivalent plumbing (deterministic parameter init in-script)
# ---------------------------------------------------------------------------
def generate_base_kernel_size(kernel_size, N):
    c, d = kernel_size[0], kernel_size[1]
    sizes = [(1, c, int(d / 2 + 1), int(d / 2 + 1))]
    for i in range(2, N):
        sizes.append((1, 1, int(d * 2 ** (-i) + 1), int(d * 2 ** (-i) + 1)))
    sizes.append((1, 1, int(d / 2 ** (N - 1)), int(d / 2 ** (N - 1))))
    return sizes


def sample_unit_kernel(key, size):
    # torch.rand -> U[0,1); then normalize by the sum (as in the reference module)
    k = jax.random.uniform(key, size, dtype=jnp.float32)
    return k / jnp.sum(k)


def _reference_forward(x, kernels):
    """Pure-JAX reference (lax conv chain) for correctness checking."""
    for w in kernels:
        x = lax.conv_general_dilated(
            x, w, window_strides=(1, 1), padding="VALID",
            dimension_numbers=("NCHW", "OIHW", "NCHW"))
    return x


def _compose_effective_weight(kernels, input_size):
    """Collapse the linear VALID conv chain into a single flat weight vector.

    The chain is a linear map R^{C*H*W} -> R (its generated kernel sizes always
    reduce the spatial dims to 1x1), so its matrix is obtained exactly by pushing
    the identity basis through the reference chain once at init.
    (For very large C*H*W, compose the small kernels with full 2-D convolutions
    instead of the basis trick.)
    """
    C, H, W = input_size
    n = C * H * W
    basis = jnp.eye(n, dtype=jnp.float32).reshape(n, C, H, W)
    y = _reference_forward(basis, kernels)
    assert y.shape == (n, 1, 1, 1), (
        "generate_base_kernel_size should reduce the spatial dims to 1x1")
    return y.reshape(n)


class ConvBaseSlicerPallas:
    """JAX/Pallas equivalent of Conv_Base_Slicer (composed-filter, single-dot forward)."""

    def __init__(self, input_size, N, key):
        self.input_size = input_size
        self.N = N
        self.kernel_sizes = generate_base_kernel_size(input_size, N)
        keys = jax.random.split(key, len(self.kernel_sizes))
        self.kernels = [sample_unit_kernel(k, s)
                        for k, s in zip(keys, self.kernel_sizes)]
        # Collapse the linear chain once at init; pad to a lane-dense (1, L) row.
        w_eff = _compose_effective_weight(self.kernels, input_size)
        L = _round_up(int(w_eff.shape[0]), LANE)
        self.w_eff_row = jnp.pad(w_eff, (0, L - w_eff.shape[0])).reshape(1, L)

    def __call__(self, x):
        return conv_base_slicer_forward(x, self.w_eff_row)


if __name__ == "__main__":
    key = jax.random.PRNGKey(0)
    k_x, k_params = jax.random.split(key)

    # input_size = (c=4, d=16, 16), N = 3 kernels:
    #   (1,4,9,9) -> (1,1,5,5) -> (1,1,4,4);  spatial 16 -> 8 -> 4 -> 1
    B, C, D = 2, 4, 16
    x = jax.random.normal(k_x, (B, C, D, D), dtype=jnp.float32)

    slicer = ConvBaseSlicerPallas(input_size=(C, D, D), N=3, key=k_params)

    out = jax.block_until_ready(slicer(x))
    assert out.shape == (B, 1, 1, 1), out.shape

    ref = jax.block_until_ready(_reference_forward(x, slicer.kernels))
    assert jnp.allclose(out, ref, rtol=1e-4, atol=1e-4), (out, ref)

    print("KERNEL_OK")
</pallas_src>

<mosaic_0001>
module attributes {stable_mosaic.version = 11 : i64} {
  func.func @_slicer_dot_kernel(%arg0: i32, %arg1: memref<8x1024xf32, #tpu.memory_space<vmem>>, %arg2: memref<1x1024xf32, #tpu.memory_space<vmem>>, %arg3: memref<8x1xf32, #tpu.memory_space<vmem>>) attributes {dimension_semantics = [#tpu.dimension_semantics<parallel>], iteration_bounds = array<i64: 1>, scalar_prefetch = 0 : i64, scratch_operands = 0 : i64, tpu.core_type = #tpu.core_type<tc>, window_params = [{transform_indices = @transform_0, window_bounds = array<i64: 8, 1024>}, {pipeline_mode = #tpu.pipeline_mode<synchronous>, transform_indices = @transform_1, window_bounds = array<i64: 1, 1024>}, {transform_indices = @transform_2, window_bounds = array<i64: 8, 1>}]} {
    %c0 = arith.constant 0 : index
    %c0_0 = arith.constant 0 : index
    %0 = vector.load %arg1[%c0, %c0_0] : memref<8x1024xf32, #tpu.memory_space<vmem>>, vector<8x1024xf32>
    %c0_1 = arith.constant 0 : index
    %c0_2 = arith.constant 0 : index
    %1 = vector.load %arg2[%c0_1, %c0_2] : memref<1x1024xf32, #tpu.memory_space<vmem>>, vector<1x1024xf32>
    %2 = vector.broadcast %1 : vector<1x1024xf32> to vector<8x1024xf32>
    %3 = arith.mulf %0, %2 : vector<8x1024xf32>
    %cst = arith.constant dense<0.000000e+00> : vector<8xf32>
    %4 = vector.multi_reduction <add>, %3, %cst [1] : vector<8x1024xf32> to vector<8xf32>
    %5 = vector.shape_cast %4 : vector<8xf32> to vector<8x1xf32>
    %c0_3 = arith.constant 0 : index
    %c0_4 = arith.constant 0 : index
    %6 = vector.load %arg3[%c0_3, %c0_4] : memref<8x1xf32, #tpu.memory_space<vmem>>, vector<8x1xf32>
    tpu.vector_store %arg3[%c0_3, %c0_4], %5 {strides = array<i32>} : memref<8x1xf32, #tpu.memory_space<vmem>>, vector<8x1xf32>,
    return
  }
  func.func @transform_0(%arg0: i32) -> (i32, i32) {
    %c0_i32 = arith.constant 0 : i32
    %c0_i32_0 = arith.constant 0 : i32
    return %arg0, %c0_i32 : i32, i32
  }
  func.func @transform_1(%arg0: i32) -> (i32, i32) {
    %c0_i32 = arith.constant 0 : i32
    %c0_i32_0 = arith.constant 0 : i32
    %c0_i32_1 = arith.constant 0 : i32
    return %c0_i32, %c0_i32_0 : i32, i32
  }
  func.func @transform_2(%arg0: i32) -> (i32, i32) {
    %c0_i32 = arith.constant 0 : i32
    %c0_i32_0 = arith.constant 0 : i32
    return %arg0, %c0_i32 : i32, i32
  }
}

</mosaic_0001>

<bundles_post_ra>
// kernel: conv_base_slicer_forward.1
= control target key start
LH: loop header
LB: loop body
LE: loop exit
PB: predicated region body
PF: predicated region fallthrough
CT: control target
= control target key end

     0   :  { %v21_v0 = vlaneseq  ;;  %vm78_vm0 = vcmask 7168   ;;  %s129_s1 = inlined_call_operand.vmem [shape: f32[1,1024], index: 1, kind: input, shape index: {}]   ;;  %s130_s0 = inlined_call_operand.vmem [shape: f32[8,1024], index: 0, kind: input, shape index: {}]   ;;  %s131_s2 = inlined_call_operand.vmem [shape: f32[8,1], index: 2, kind: output, shape index: {}]  }
   0x1   :  { %v19_v2 = vld [vmem:[%s129_s1] sm:$0xff]  ;;  %v12_v8 = vld [vmem:[%s130_s0 + $0x8] sm:$0xff]  ;;  %v13_v9 = vld [vmem:[%s130_s0 + $0x10] sm:$0xff] }
   0x2   :  { %v22_v1 = vshrl.u32 %v21_v0, 7  ;;  %v11_v7 = vld [vmem:[%s130_s0] sm:$0xff]  ;;  %v14_v16 = vld [vmem:[%s130_s0 + $0x18] sm:$0xff]  ;;  %v16_v27 = vld [vmem:[%s130_s0 + $0x28] sm:$0xff] }
   0x3   :  { %v15_v22 = vld [vmem:[%s130_s0 + $0x20] sm:$0xff]  ;;  %v17_v31 = vld [vmem:[%s130_s0 + $0x30] sm:$0xff]  ;;  %v18_v35 = vld [vmem:[%s130_s0 + $0x38] sm:$0xff] }
   0x4   :  { %v23_v3 = vsub.s32 0, %v22_v1  ;;  %v27_v4 = vsub.s32 1, %v22_v1  ;;  %v31_v5 = vsub.s32 2, %v22_v1  ;;  %v35_v6 = vsub.s32 3, %v22_v1 }
   0x5   :  { %v39_v10 = vsub.s32 4, %v22_v1  ;;  %v43_v11 = vsub.s32 5, %v22_v1  ;;  %v47_v17 = vsub.s32 6, %v22_v1  ;;  %v51_v24 = vsub.s32 7, %v22_v1 }
   0x6   :  { %v24_v12 = vrot.slane %v19_v2, %v23_v3  ;;  %v28_v13 = vrot.slane %v19_v2, %v27_v4  ;;  %v32_v14 = vrot.slane %v19_v2, %v31_v5  ;;  %v36_v15 = vrot.slane %v19_v2, %v35_v6 }
   0x7   :  { %v40_v18 = vrot.slane %v19_v2, %v39_v10  ;;  %v44_v23 = vrot.slane %v19_v2, %v43_v11  ;;  %v48_v28 = vrot.slane %v19_v2, %v47_v17  ;;  %v52_v32 = vrot.slane %v19_v2, %v51_v24 }
   0x8   :  { %v61_v19 = vmul.f32 %v24_v12, %v11_v7  ;;  %v62_v20 = vmul.f32 %v28_v13, %v12_v8  ;;  %v63_v21 = vmul.f32 %v32_v14, %v13_v9  ;;  %v64_v25 = vmul.f32 %v36_v15, %v14_v16 }
   0x9   :  { %v65_v29 = vmul.f32 %v40_v18, %v15_v22  ;;  %v66_v33 = vmul.f32 %v44_v23, %v16_v27  ;;  %v67_v36 = vmul.f32 %v48_v28, %v17_v31  ;;  %v68_v38 = vmul.f32 %v52_v32, %v18_v35 }
   0xa   :  { %v69_v26 = vadd.f32 %v62_v20, %v61_v19 }
   0xc   :  { %v70_v30 = vadd.f32 %v69_v26, %v63_v21 }
   0xe   :  { %v71_v34 = vadd.f32 %v70_v30, %v64_v25 }
  0x10   :  { %v72_v37 = vadd.f32 %v71_v34, %v65_v29 }
  0x12   :  { %v73_v39 = vadd.f32 %v72_v37, %v66_v33 }
  0x14   :  { %v74_v40 = vadd.f32 %v73_v39, %v67_v36 }
  0x16   :  { %v75_v41 = vadd.f32 %v74_v40, %v68_v38 }
  0x18   :  { %76 = vadd.xlane.f32.xlu0 %v75_v41 }
  0xa1   :  { %v77_v42 = vpop.xlane.xlu0 %76 }
  0xa2   :  { %79 = vst.msk [vmem:[%s131_s2] sm:$0xff] %vm78_vm0, %v77_v42 }

</bundles_post_ra>
